<compile_context>
chip_gen: v7x
topology: tpu7x:2x2x1
jax: 0.10.0
libtpu: 0.0.40
codegen_flags: <defaults>
</compile_context>

<pallas_src>
import functools

import jax
import jax.numpy as jnp
from jax import lax
from jax.experimental import pallas as pl
from jax.experimental.pallas import tpu as pltpu


def _st_emb_onehot_kernel(gid_ref, tbl_ref, out_ref):
    """Gather one batch tile of embeddings via a one-hot MXU matmul.

    gid_ref : VMEM (tile_b*F, 1) int32 -- packed-table row id per (sample, field)
    tbl_ref : VMEM (Vp, E)             -- all field tables stacked row-wise
    out_ref : VMEM (tile_b*F, E) f32   -- dense output tile (sample-major, field-minor)
    """
    rows = out_ref.shape[0]
    vp = tbl_ref.shape[0]

    ids = gid_ref[...]                                       # (rows, 1) int32
    iota = lax.broadcasted_iota(jnp.int32, (rows, vp), 1)    # vocab index along lanes
    one_hot = (iota == ids).astype(tbl_ref.dtype)            # (rows, Vp)

    # Exactly one 1.0 per row -> the matmul IS the gather.  HIGHEST precision
    # keeps an f32 table bit-exact; for a bf16 table DEFAULT is already exact.
    precision = (lax.Precision.HIGHEST
                 if tbl_ref.dtype == jnp.float32 else lax.Precision.DEFAULT)
    out_ref[...] = jnp.dot(
        one_hot, tbl_ref[...],
        precision=precision,
        preferred_element_type=jnp.float32,
    ).astype(out_ref.dtype)                                  # one dense tile store


def pack_tables(tables, dtype=jnp.float32, vp_align=128):
    """Stack per-field (V_f, E) tables row-wise into one (Vp, E) packed table.

    Returns (packed_table, per-field row offsets, per-field vocab sizes).
    Vp is padded (with zero rows) to a multiple of `vp_align` so the one-hot
    contraction length is MXU friendly.  Use dtype=jnp.bfloat16 to halve the
    table's VMEM residency on v6e/v7x (the demo keeps f32 for bit-exactness).
    """
    e = tables[0].shape[1]
    offsets, off = [], 0
    for t in tables:
        offsets.append(off)
        off += t.shape[0]
    v_tot = off
    v_pad = ((v_tot + vp_align - 1) // vp_align) * vp_align
    cat = jnp.concatenate(tables, axis=0).astype(dtype)
    if v_pad != v_tot:
        cat = jnp.concatenate([cat, jnp.zeros((v_pad - v_tot, e), dtype)], axis=0)
    vocab_sizes = jnp.asarray([t.shape[0] for t in tables], jnp.int32)
    return cat, jnp.asarray(offsets, jnp.int32), vocab_sizes


@functools.partial(jax.jit, static_argnames=("tile_b",))
def st_emb_forward(table_cat, offsets, vocab_sizes, static_ids, tile_b=128):
    """StEmb forward: static_ids (B, F) int -> embeddings (B, F, E) f32."""
    B, F = static_ids.shape
    Vp, E = table_cat.shape

    # Clamp per-field ids (defensive: OOB ids would otherwise silently select a
    # neighbouring field's rows in the packed table), then add row offsets.
    ids = jnp.clip(static_ids.astype(jnp.int32), 0, vocab_sizes[None, :] - 1)
    gid = ids + offsets[None, :]                               # (B, F)

    # Batch tiling: tile_b samples per grid step (multiple of 8 for sublanes);
    # raise tile_b towards 128-512 at production batch sizes.
    tile_b = max(8, min(int(tile_b), ((B + 7) // 8) * 8))
    tile_b = ((tile_b + 7) // 8) * 8
    b_pad = pl.cdiv(B, tile_b) * tile_b
    if b_pad != B:                                             # pad batch to a full tile
        gid = jnp.concatenate([gid, jnp.zeros((b_pad - B, F), jnp.int32)], axis=0)
    gid_col = gid.reshape(b_pad * F, 1)        # sample-major, field-minor row ids

    rows_per_tile = tile_b * F
    grid = (b_pad // tile_b,)

    # Explicit VMEM budget: double-buffered table input + id/out blocks + slack
    # for the in-kernel one-hot.  Clamped to stay inside v7x's 64 MiB VMEM.
    itemsize = jnp.dtype(table_cat.dtype).itemsize
    needed = int(2 * Vp * E * itemsize
                 + 4 * rows_per_tile * (1 + E) * 4
                 + 2 * rows_per_tile * Vp * 4
                 + (4 << 20))
    vmem_limit = min(max(needed, 32 << 20), 64 << 20)

    out = pl.pallas_call(
        _st_emb_onehot_kernel,
        out_shape=jax.ShapeDtypeStruct((b_pad * F, E), jnp.float32),
        grid=grid,
        in_specs=[
            # ids stream with the pipeline (never used in an index_map).
            pl.BlockSpec((rows_per_tile, 1), lambda i: (i, 0)),
            # Whole packed table, constant block index -> fetched once per core.
            pl.BlockSpec((Vp, E), lambda i: (0, 0)),
        ],
        out_specs=pl.BlockSpec((rows_per_tile, E), lambda i: (i, 0)),
        compiler_params=pltpu.CompilerParams(
            dimension_semantics=("parallel",),      # megacore shards batch tiles
            vmem_limit_bytes=vmem_limit),
        cost_estimate=pl.CostEstimate(
            flops=2 * b_pad * F * Vp * E,
            transcendentals=0,
            bytes_accessed=int(Vp * E * itemsize
                               + b_pad * F * 4
                               + b_pad * F * E * 4)),
    )(gid_col, table_cat)

    # Free layout plumbing: (b_pad*F, E) -> (B, F, E).
    return out[:B * F].reshape(B, F, E)


def st_emb_reference(tables, static_ids):
    # Pure-JAX reference (== torch: per-field F.embedding, then cat along dim 1).
    F = static_ids.shape[1]
    return jnp.stack(
        [jnp.take(tables[f], static_ids[:, f], axis=0) for f in range(F)], axis=1)


if __name__ == "__main__":
    key = jax.random.PRNGKey(0)

    B = 32                                   # batch
    E = 8                                    # embedding_size
    max_idxs = {"c0": 7, "c1": 11, "c2": 5, "c3": 9, "c4": 15}  # vocab = max_idx+1
    col_names = list(max_idxs.keys())
    F = len(col_names)

    ks = jax.random.split(key, 2 * F)
    tables = [
        (0.1 * jax.random.normal(ks[f], (max_idxs[c] + 1, E))).astype(jnp.float32)
        for f, c in enumerate(col_names)
    ]
    static_ids = jnp.stack(
        [jax.random.randint(ks[F + f], (B,), 0, max_idxs[c] + 1)
         for f, c in enumerate(col_names)], axis=1).astype(jnp.int32)    # (B, F)

    table_cat, offsets, vocab_sizes = pack_tables(tables, dtype=jnp.float32)
    out = st_emb_forward(table_cat, offsets, vocab_sizes, static_ids, tile_b=16)
    out = jax.block_until_ready(out)

    ref = st_emb_reference(tables, static_ids)
    assert out.shape == (B, F, E), out.shape
    max_err = float(jnp.max(jnp.abs(out - ref)))
    assert jnp.allclose(out, ref, rtol=1e-6, atol=1e-7), max_err

    print("KERNEL_OK")
</pallas_src>

<mosaic_0001>
module attributes {stable_mosaic.version = 11 : i64} {
  func.func @_st_emb_onehot_kernel(%arg0: i32, %arg1: memref<80x1xi32, #tpu.memory_space<vmem>>, %arg2: memref<128x8xf32, #tpu.memory_space<vmem>>, %arg3: memref<80x8xf32, #tpu.memory_space<vmem>>) attributes {dimension_semantics = [#tpu.dimension_semantics<parallel>], iteration_bounds = array<i64: 2>, scalar_prefetch = 0 : i64, scratch_operands = 0 : i64, tpu.core_type = #tpu.core_type<tc>, window_params = [{transform_indices = @transform_0, window_bounds = array<i64: 80, 1>}, {pipeline_mode = #tpu.pipeline_mode<synchronous>, transform_indices = @transform_1, window_bounds = array<i64: 128, 8>}, {transform_indices = @transform_2, window_bounds = array<i64: 80, 8>}]} {
    %c0 = arith.constant 0 : index
    %c0_0 = arith.constant 0 : index
    %0 = vector.load %arg1[%c0, %c0_0] : memref<80x1xi32, #tpu.memory_space<vmem>>, vector<80x1xi32>
    %1 = tpu.iota {dimensions = array<i32: 1>} : vector<80x128xi32>
    %2 = vector.broadcast %0 : vector<80x1xi32> to vector<80x128xi32>
    %3 = arith.cmpi eq, %1, %2 : vector<80x128xi32>
    %4 = arith.extui %3 : vector<80x128xi1> to vector<80x128xi32>
    %5 = arith.sitofp %4 : vector<80x128xi32> to vector<80x128xf32>
    %c0_1 = arith.constant 0 : index
    %c0_2 = arith.constant 0 : index
    %6 = vector.load %arg2[%c0_1, %c0_2] : memref<128x8xf32, #tpu.memory_space<vmem>>, vector<128x8xf32>
    %cst = arith.constant dense<0.000000e+00> : vector<80x8xf32>
    %7 = tpu.matmul %5, %6, %cst {dimension_numbers = #tpu.dot_dimension_numbers<[1], [0], [0], [1], [0, 0, 1, 1], [], []>, precision = #tpu.contract_precision<fp32>} : vector<80x128xf32>, vector<128x8xf32>, vector<80x8xf32> -> vector<80x8xf32>
    %c0_3 = arith.constant 0 : index
    %c0_4 = arith.constant 0 : index
    %8 = vector.load %arg3[%c0_3, %c0_4] : memref<80x8xf32, #tpu.memory_space<vmem>>, vector<80x8xf32>
    tpu.vector_store %arg3[%c0_3, %c0_4], %7 {strides = array<i32>} : memref<80x8xf32, #tpu.memory_space<vmem>>, vector<80x8xf32>,
    return
  }
  func.func @transform_0(%arg0: i32) -> (i32, i32) {
    %c0_i32 = arith.constant 0 : i32
    %c0_i32_0 = arith.constant 0 : i32
    return %arg0, %c0_i32 : i32, i32
  }
  func.func @transform_1(%arg0: i32) -> (i32, i32) {
    %c0_i32 = arith.constant 0 : i32
    %c0_i32_0 = arith.constant 0 : i32
    %c0_i32_1 = arith.constant 0 : i32
    return %c0_i32, %c0_i32_0 : i32, i32
  }
  func.func @transform_2(%arg0: i32) -> (i32, i32) {
    %c0_i32 = arith.constant 0 : i32
    %c0_i32_0 = arith.constant 0 : i32
    return %arg0, %c0_i32 : i32, i32
  }
}

</mosaic_0001>

<bundles_post_ra>
// kernel: st_emb_forward.1
= control target key start
LH: loop header
LB: loop body
LE: loop exit
PB: predicated region body
PF: predicated region fallthrough
CT: control target
= control target key end

     0   :  { %s2098_s9 = smov 0   ;;  %s2760_s0 = inlined_call_operand.vmem [shape: s32[160,1], index: 0, kind: input, shape index: {}]   ;;  %s2761_s1 = inlined_call_operand.vmem [shape: f32[128,8], index: 1, kind: input, shape index: {}]   ;;  %s2762_s2 = inlined_call_operand.vmem [shape: f32[160,8], index: 2, kind: output, shape index: {}]  }
   0x1 LB: > { %s1330_s10 = sadd.s32 4294967295, %s2078_s9   ;;  %p1334_p0 = scmp.ge.s32.totalorder %s2078_s9, 1  ;;  %s2078_s9 = sphi %s2098_s9, %s12_s9  }
   0x2   : > { %p113_p1 = scmp.lt.s32.totalorder %s2078_s9, 3 }
   0x4   : > { %p114_p2 = pnand %p1334_p0, %p113_p1 }
   0x5   : > { %s135_s11 = smul.u32 (!%p114_p2), 10, %s1330_s10  ;;  %v219_v0 = vld [vmem:[%s2761_s1] sm:$0xff] (!%p114_p2)  ;;  %v220_v1 = vld [vmem:[%s2761_s1 + $0x8] sm:$0xff] (!%p114_p2)  ;;  %v2115_v2 = vld [vmem:[%s2761_s1 + $0x10] sm:$0xff] (!%p114_p2)  ;;  %v2080_v3 = vmov (!%p114_p2), 0   ;;  %vm1263_vm10 = vcmask (!%p114_p2), 64512  }
   0x6   : > { %117 = sbr.rel (%p114_p2) target bundleno = 455 (0x1c7), region = 28  ;;  %2071 = vset.pattern.permute.xlu1 (!%p114_p2), %v2080_v3  ;;  %2070 = vset.pattern.permute.xlu0 (!%p114_p2), %v2080_v3  ;;  %v236_v4 = vand.u32 (!%p114_p2), 4294901760, %v219_v0  ;;  %v239_v5 = vand.u32 (!%p114_p2), 4294901760, %v220_v1  ;;  %v2120_v6 = vld [vmem:[%s2761_s1 + $0x18] sm:$0xff] (!%p114_p2)  ;;  %v242_v7 = vand.u32 (!%p114_p2), 4294901760, %v2115_v2  ;;  %v2126_v8 = vld [vmem:[%s2761_s1 + $0x20] sm:$0xff] (!%p114_p2) }
   0x7   : > { %v2131_v9 = vld [vmem:[%s2761_s1 + $0x28] sm:$0xff] (!%p114_p2)  ;;  %p136_p3 = scmp.lt.s32.totalorder (!%p114_p2), %s135_s11, 19  ;;  %v245_v10 = vand.u32 (!%p114_p2), 4294901760, %v2120_v6  ;;  %v248_v12 = vand.u32 (!%p114_p2), 4294901760, %v2126_v8  ;;  %v2145_v15 = vld [vmem:[%s2761_s1 + $0x30] sm:$0xff] (!%p114_p2)  ;;  %v2150_v16 = vld [vmem:[%s2761_s1 + $0x38] sm:$0xff] (!%p114_p2) }
   0x8   : > { %v2134_v11 = vpack.c.bf16 (!%p114_p2), %v239_v5, %v236_v4  ;;  %v251_v13 = vand.u32 (!%p114_p2), 4294901760, %v2131_v9  ;;  %v254_v18 = vand.u32 (!%p114_p2), 4294901760, %v2145_v15  ;;  %v257_v19 = vand.u32 (!%p114_p2), 4294901760, %v2150_v16  ;;  %v2177_v20 = vld [vmem:[%s2761_s1 + $0x40] sm:$0xff] (!%p114_p2)  ;;  %v2184_v23 = vld [vmem:[%s2761_s1 + $0x48] sm:$0xff] (!%p114_p2)  ;;  %v2203_v29 = vld [vmem:[%s2761_s1 + $0x50] sm:$0xff] (!%p114_p2) }
   0x9   : > { %v2140_v14 = vpack.c.bf16 (!%p114_p2), %v245_v10, %v242_v7  ;;  %v260_v27 = vand.u32 (!%p114_p2), 4294901760, %v2177_v20  ;;  %v263_v28 = vand.u32 (!%p114_p2), 4294901760, %v2184_v23  ;;  %v2208_v30 = vld [vmem:[%s2761_s1 + $0x58] sm:$0xff] (!%p114_p2)  ;;  %v2210_v31 = vsub.f32 (!%p114_p2), %v219_v0, %v236_v4  ;;  %v2229_v37 = vld [vmem:[%s2761_s1 + $0x60] sm:$0xff] (!%p114_p2)  ;;  %v2236_v39 = vld [vmem:[%s2761_s1 + $0x68] sm:$0xff] (!%p114_p2) }
   0xa   : > { %1914 = vmatprep.subr.bf16.mxu0 (!%p114_p2), %v2134_v11  ;;  %1818 = vmatprep.subr.bf16.mxu1 (!%p114_p2), %v2134_v11  ;;  %v2170_v17 = vpack.c.bf16 (!%p114_p2), %v251_v13, %v248_v12  ;;  %v2196_v26 = vpack.c.bf16 (!%p114_p2), %v257_v19, %v254_v18  ;;  %v266_v35 = vand.u32 (!%p114_p2), 4294901760, %v2203_v29  ;;  %v269_v36 = vand.u32 (!%p114_p2), 4294901760, %v2208_v30  ;;  %v2241_v40 = vld [vmem:[%s2761_s1 + $0x70] sm:$0xff] (!%p114_p2)  ;;  %v2246_v41 = vld [vmem:[%s2761_s1 + $0x78] sm:$0xff] (!%p114_p2) }
   0xb   : > { %1916 = vmatpush3.bf16.msra.mxu0 (!%p114_p2), %v2134_v11  ;;  %1820 = vmatpush3.bf16.msra.mxu1 (!%p114_p2), %v2134_v11  ;;  %v2222_v34 = vpack.c.bf16 (!%p114_p2), %v263_v28, %v260_v27  ;;  %v2231_v38 = vsub.f32 (!%p114_p2), %v220_v1, %v239_v5  ;;  %v419_v42 = vand.u32 (!%p114_p2), 4294901760, %v2210_v31  ;;  %v2250_v43 = vsub.f32 (!%p114_p2), %v2115_v2, %v242_v7 }
   0xc   : > { %1918 = vmatprep.subr.bf16.mxu0 (!%p114_p2), %v2140_v14  ;;  %1822 = vmatprep.subr.bf16.mxu1 (!%p114_p2), %v2140_v14  ;;  %v272_v46 = vand.u32 (!%p114_p2), 4294901760, %v2229_v37  ;;  %v2258_v47 = vsub.f32 (!%p114_p2), %v2120_v6, %v245_v10  ;;  %v2266_v48 = vpack.c.bf16 (!%p114_p2), %v269_v36, %v266_v35  ;;  %v275_v49 = vand.u32 (!%p114_p2), 4294901760, %v2236_v39 }
   0xd   : > { %s2764_s11 = smov (!%p136_p3, %s135_s11), 19  ;;  %v426_v50 = vand.u32 4294901760, %v2231_v38  ;;  %v433_v51 = vand.u32 4294901760, %v2250_v43  ;;  %v278_v52 = vand.u32 4294901760, %v2241_v40  ;;  %v281_v53 = vand.u32 4294901760, %v2246_v41 }
   0xe   : > { %s1335_s28 = sshll.u32 %s2764_s11, 3  ;;  %v440_v54 = vand.u32 4294901760, %v2258_v47  ;;  %v420_v55 = vsub.f32 %v2210_v31, %v419_v42  ;;  %v2279_v57 = vsub.f32 %v2126_v8, %v248_v12  ;;  %v2291_v62 = vsub.f32 %v2131_v9, %v251_v13 }
   0xf   : > { %s2162_s3 = scalar_lea.vmem %s2760_s0, %s1335_s28  ;;  %1920 = vmatpush3.bf16.msra.mxu0 %v2140_v14  ;;  %1824 = vmatpush3.bf16.msra.mxu1 %v2140_v14  ;;  %v434_v56 = vsub.f32 %v2250_v43, %v433_v51  ;;  %v2299_v63 = vpack.c.bf16 %v275_v49, %v272_v46  ;;  %v427_v0 = vsub.f32 %v2231_v38, %v426_v50  ;;  %s2735_s24 = scalar_lea.vmem %s2762_s2, %s1335_s28 }
  0x10   : > { %v149_v21 = vld [vmem:[%s2162_s3 + $0x10] sm:$0xff]  ;;  %v147_v22 = vld [vmem:[%s2162_s3] sm:$0xff]  ;;  %v150_v24 = vld [vmem:[%s2162_s3 + $0x18] sm:$0xff]  ;;  %1922 = vmatprep.subr.bf16.mxu0 %v2170_v17  ;;  %1826 = vmatprep.subr.bf16.mxu1 %v2170_v17  ;;  %v2285_v60 = vpack.c.bf16 %v440_v54, %v433_v51  ;;  %v441_v61 = vsub.f32 %v2258_v47, %v440_v54  ;;  %v447_v2 = vand.u32 4294901760, %v2279_v57  ;;  %v2307_v3 = vpack.c.bf16 %v281_v53, %v278_v52 }
  0x11   : > { %166 = vperm.xlu1 %2071, %v149_v21   ;;  %160 = vperm.xlu0 %2070, %v147_v22   ;;  %v148_v25 = vld [vmem:[%s2162_s3 + $0x8] sm:$0xff]  ;;  %v151_v33 = vld [vmem:[%s2162_s3 + $0x20] sm:$0xff]  ;;  %v154_v44 = vld [vmem:[%s2162_s3 + $0x38] sm:$0xff]  ;;  %v435_v1 = vand.u32 4294901760, %v434_v56  ;;  %v454_v5 = vand.u32 4294901760, %v2291_v62  ;;  %v2314_v7 = vsub.f32 %v2145_v15, %v254_v18  ;;  %v2319_v8 = vsub.f32 %v2150_v16, %v257_v19 }
  0x12   : > { %v152_v32 = vld [vmem:[%s2162_s3 + $0x28] sm:$0xff]  ;;  %v153_v45 = vld [vmem:[%s2162_s3 + $0x30] sm:$0xff]  ;;  %v155_v59 = vld [vmem:[%s2162_s3 + $0x40] sm:$0xff]  ;;  %v442_v4 = vand.u32 4294901760, %v441_v61  ;;  %v448_v6 = vsub.f32 %v2279_v57, %v447_v2  ;;  %v421_v9 = vand.u32 4294901760, %v420_v55  ;;  %v428_v15 = vand.u32 4294901760, %v427_v0 }
  0x13   : > { %1924 = vmatpush3.bf16.msra.mxu0 %v2170_v17  ;;  %1828 = vmatpush3.bf16.msra.mxu1 %v2170_v17  ;;  %v156_v58 = vld [vmem:[%s2162_s3 + $0x48] sm:$0xff]  ;;  %v2325_v12 = vpack.c.bf16 %v454_v5, %v447_v2  ;;  %v455_v13 = vsub.f32 %v2291_v62, %v454_v5  ;;  %v461_v16 = vand.u32 4294901760, %v2314_v7  ;;  %v468_v19 = vand.u32 4294901760, %v2319_v8 }
  0x14   : > { %1926 = vmatprep.subr.bf16.mxu0 %v2196_v26  ;;  %1830 = vmatprep.subr.bf16.mxu1 %v2196_v26  ;;  %v2323_v10 = vpack.c.bf16 %v442_v4, %v435_v1  ;;  %v449_v18 = vand.u32 4294901760, %v448_v6  ;;  %v2350_v51 = vpack.c.bf16 %v428_v15, %v421_v9  ;;  %v509_v4 = vsub.f32 %v2236_v39, %v275_v49 }
  0x15   : > { %169 = vperm.xlu1 %2071, %v150_v24   ;;  %163 = vperm.xlu0 %2070, %v148_v25   ;;  %v456_v21 = vand.u32 4294901760, %v455_v13  ;;  %v2332_v22 = vpack.c.bf16 %v468_v19, %v461_v16  ;;  %v462_v24 = vsub.f32 %v2314_v7, %v461_v16  ;;  %v469_v25 = vsub.f32 %v2319_v8, %v468_v19 }
  0x16   : > { %v510_v13 = vand.u32 4294901760, %v509_v4  ;;  %v516_v16 = vsub.f32 %v2241_v40, %v278_v52  ;;  %v2398_v52 = vpack.c.bf16 %v2258_v47, %v2250_v43 }
  0x17   : > { %1928 = vmatpush3.bf16.msra.mxu0 %v2196_v26  ;;  %1832 = vmatpush3.bf16.msra.mxu1 %v2196_v26  ;;  %v463_v54 = vand.u32 4294901760, %v462_v24 }
  0x18   : > { %1930 = vmatprep.subr.bf16.mxu0 %v2222_v34  ;;  %1834 = vmatprep.subr.bf16.mxu1 %v2222_v34  ;;  %v511_v19 = vsub.f32 %v509_v4, %v510_v13  ;;  %v517_v39 = vand.u32 4294901760, %v516_v16 }
  0x19   : > { %175 = vperm.xlu1 %2071, %v152_v32   ;;  %172 = vperm.xlu0 %2070, %v151_v33   ;;  %v474_v32 = vsub.f32 %v2177_v20, %v260_v27  ;;  %v2341_v33 = vpack.c.bf16 %v426_v50, %v419_v42  ;;  %v470_v20 = vand.u32 4294901760, %v469_v25  ;;  %v488_v50 = vsub.f32 %v2203_v29, %v266_v35 }
  0x1a   : > { %v512_v24 = vand.u32 4294901760, %v511_v19 }
  0x1b   : > { %1932 = vmatpush3.bf16.msra.mxu0 %v2222_v34  ;;  %1836 = vmatpush3.bf16.msra.mxu1 %v2222_v34  ;;  %v475_v27 = vand.u32 4294901760, %v474_v32  ;;  %v2352_v56 = vpack.c.bf16 %v470_v20, %v463_v54  ;;  %v489_v61 = vand.u32 4294901760, %v488_v50  ;;  %v518_v54 = vsub.f32 %v516_v16, %v517_v39 }
  0x1c   : > { %1934 = vmatprep.subr.bf16.mxu0 %v2266_v48  ;;  %1838 = vmatprep.subr.bf16.mxu1 %v2266_v48 }
  0x1d   : > { %181 = vperm.xlu1 %2071, %v154_v44   ;;  %178 = vperm.xlu0 %2070, %v153_v45   ;;  %v2343_v44 = vpack.c.bf16 %v456_v21, %v449_v18  ;;  %v481_v45 = vsub.f32 %v2184_v23, %v263_v28  ;;  %v476_v42 = vsub.f32 %v474_v32, %v475_v27 }
  0x1e   : > { %v495_v23 = vsub.f32 %v2208_v30, %v269_v36  ;;  %v490_v35 = vsub.f32 %v488_v50, %v489_v61  ;;  %v502_v30 = vsub.f32 %v2229_v37, %v272_v46  ;;  %v523_v37 = vsub.f32 %v2246_v41, %v281_v53 }
  0x1f   : > { %1936 = vmatpush3.bf16.msra.mxu0 %v2266_v48  ;;  %1840 = vmatpush3.bf16.msra.mxu1 %v2266_v48  ;;  %v482_v55 = vand.u32 4294901760, %v481_v45  ;;  %v2394_v41 = vpack.c.bf16 %v2231_v38, %v2210_v31  ;;  %v2402_v53 = vpack.c.bf16 %v2291_v62, %v2279_v57  ;;  %v157_v38 = vlaneseq }
  0x20   : > { %1938 = vmatprep.subr.bf16.mxu0 %v2299_v63  ;;  %1842 = vmatprep.subr.bf16.mxu1 %v2299_v63  ;;  %v496_v0 = vand.u32 4294901760, %v495_v23  ;;  %v491_v5 = vand.u32 4294901760, %v490_v35  ;;  %v503_v9 = vand.u32 4294901760, %v502_v30  ;;  %v524_v49 = vand.u32 4294901760, %v523_v37 }
  0x21   : > { %187 = vperm.xlu1 %2071, %v156_v58   ;;  %184 = vperm.xlu0 %2070, %v155_v59   ;;  %v2362_v28 = vpack.c.bf16 %v482_v55, %v475_v27  ;;  %v483_v58 = vsub.f32 %v481_v45, %v482_v55  ;;  %v477_v59 = vand.u32 4294901760, %v476_v42  ;;  %v519_v55 = vand.u32 4294901760, %v518_v54 }
  0x22   : > { %v2366_v29 = vpack.c.bf16 %v496_v0, %v489_v61  ;;  %v497_v2 = vsub.f32 %v495_v23, %v496_v0  ;;  %v504_v18 = vsub.f32 %v502_v30, %v503_v9  ;;  %v2384_v46 = vpack.c.bf16 %v510_v13, %v503_v9 }
  0x23   : > { %1940 = vmatpush3.bf16.msra.mxu0 %v2299_v63  ;;  %1844 = vmatpush3.bf16.msra.mxu1 %v2299_v63  ;;  %v484_v1 = vand.u32 4294901760, %v483_v58  ;;  %v2386_v25 = vpack.c.bf16 %v524_v49, %v517_v39  ;;  %v525_v20 = vsub.f32 %v523_v37, %v524_v49  ;;  %v2406_v58 = vpack.c.bf16 %v2319_v8, %v2314_v7 }
  0x24   : > { %1942 = vmatprep.subr.bf16.mxu0 %v2307_v3  ;;  %1846 = vmatprep.subr.bf16.mxu1 %v2307_v3  ;;  %v498_v6 = vand.u32 4294901760, %v497_v2  ;;  %v505_v21 = vand.u32 4294901760, %v504_v18  ;;  %v2410_v61 = vpack.c.bf16 %v495_v23, %v488_v50  ;;  %v2412_v0 = vpack.c.bf16 %v509_v4, %v502_v30 }
  0x25   : > { %v2371_v36 = vpack.c.bf16 %v484_v1, %v477_v59  ;;  %v526_v42 = vand.u32 4294901760, %v525_v20  ;;  %v2408_v59 = vpack.c.bf16 %v481_v45, %v474_v32  ;;  %v2414_v31 = vpack.c.bf16 %v523_v37, %v516_v16 }
  0x26   : > { %v2376_v15 = vpack.c.bf16 %v498_v6, %v491_v5  ;;  %v2388_v27 = vpack.c.bf16 %v512_v24, %v505_v21  ;;  %v2416_v1 = vand.u32 127, %v157_v38  ;;  %v2081_v57 = vmov 0.0  }
  0x27   : > { %1944 = vmatpush3.bf16.msra.mxu0 %v2307_v3  ;;  %1848 = vmatpush3.bf16.msra.mxu1 %v2307_v3  ;;  %v2390_v40 = vpack.c.bf16 %v526_v42, %v519_v55 }
  0x28   : > { %1946 = vmatprep.subr.bf16.mxu0 %v2341_v33  ;;  %1850 = vmatprep.subr.bf16.mxu1 %v2350_v51 }
  0x90   : > { %v2418_v43 = vpop.permute.xlu1 %166  ;;  %v2420_v47 = vpop.permute.xlu0 %160 }
  0x91   : > { %vm191_vm0 = vcmp.eq.s32.totalorder %v2416_v1, %v2418_v43  ;;  %vm189_vm1 = vcmp.eq.s32.totalorder %v2416_v1, %v2420_v47 }
  0x92   : > { %v1339_v62 = vsel %vm191_vm0, 1.0, %v2081_v57  ;;  %v1337_v7 = vsel %vm189_vm1, 1.0, %v2081_v57 }
  0x93   : > { %v2434_v8 = vsub.f32 %v1339_v62, %v1339_v62  ;;  %v2436_v32 = vsub.f32 %v1337_v7, %v1337_v7 }
  0x94   : > { %v2438_v45 = vpop.permute.xlu1 %169  ;;  %v2440_v50 = vpop.permute.xlu0 %163 }
  0x95   : > { %vm192_vm2 = vcmp.eq.s32.totalorder %v2416_v1, %v2438_v45  ;;  %vm190_vm3 = vcmp.eq.s32.totalorder %v2416_v1, %v2440_v50  ;;  %v318_v23 = vand.u32 4294901760, %v2436_v32  ;;  %v338_v35 = vand.u32 4294901760, %v2434_v8 }
  0x96   : > { %v1340_v2 = vsel %vm192_vm2, 1.0, %v2081_v57  ;;  %v1338_v30 = vsel %vm190_vm3, 1.0, %v2081_v57 }
  0x97   : > { %v2456_v4 = vsub.f32 %v1340_v2, %v1340_v2  ;;  %v2458_v5 = vsub.f32 %v1338_v30, %v1338_v30  ;;  %1708 = vmatprep.mubr.f32.mxu0 %v318_v23  ;;  %v319_v6 = vsub.f32 %v2436_v32, %v318_v23  ;;  %v339_v18 = vsub.f32 %v2434_v8, %v338_v35 }
  0x98   : > { %v2461_v9 = vpop.permute.xlu1 %175  ;;  %v2463_v13 = vpop.permute.xlu0 %172 }
  0x99   : > { %vm194_vm4 = vcmp.eq.s32.totalorder %v2416_v1, %v2461_v9  ;;  %vm193_vm5 = vcmp.eq.s32.totalorder %v2416_v1, %v2463_v13  ;;  %v320_v16 = vand.u32 4294901760, %v319_v6  ;;  %v328_v37 = vand.u32 4294901760, %v2458_v5 }
  0x9a   : > { %v1342_v19 = vsel %vm194_vm4, 1.0, %v2081_v57  ;;  %v1341_v21 = vsel %vm193_vm5, 1.0, %v2081_v57  ;;  %v348_v39 = vand.u32 4294901760, %v2456_v4  ;;  %v340_v42 = vand.u32 4294901760, %v339_v18 }
  0x9b   : > { %v2480_v49 = vsub.f32 %v1342_v19, %v1342_v19  ;;  %v2482_v24 = vsub.f32 %v1341_v21, %v1341_v21  ;;  %1567 = vmatprep.mubr.f32.mxu1 %v320_v16  ;;  %1709 = vmatmul.mubr.f32.vlgmr.msra.gmra.mrb[0].mxu0 %v328_v37  ;;  %v329_v54 = vsub.f32 %v2458_v5, %v328_v37 }
  0x9c   : > { %1948 = vmatpush3.bf16.msra.mxu0 %v2341_v33  ;;  %v2486_v20 = vpop.permute.xlu1 %181  ;;  %v2488_v55 = vpop.permute.xlu0 %178  ;;  %1711 = vmatprep.mubr.f32.mxu0 %v338_v35  ;;  %v349_v38 = vsub.f32 %v2456_v4, %v348_v39 }
  0x9d   : > { %vm196_vm6 = vcmp.eq.s32.totalorder %v2416_v1, %v2486_v20  ;;  %vm195_vm7 = vcmp.eq.s32.totalorder %v2416_v1, %v2488_v55  ;;  %1950 = vmatprep.subr.bf16.mxu0 %v2285_v60  ;;  %v330_v62 = vand.u32 4294901760, %v329_v54  ;;  %v358_v7 = vand.u32 4294901760, %v2482_v24 }
  0x9e   : > { %v1344_v33 = vsel %vm196_vm6, 1.0, %v2081_v57  ;;  %v1343_v23 = vsel %vm195_vm7, 1.0, %v2081_v57  ;;  %v368_v35 = vand.u32 4294901760, %v2480_v49  ;;  %v350_v6 = vand.u32 4294901760, %v349_v38 }
  0x9f   : > { %v2506_v2 = vsub.f32 %v1344_v33, %v1344_v33  ;;  %v2508_v30 = vsub.f32 %v1343_v23, %v1343_v23  ;;  %1568 = vmatmul.mubr.f32.vlgmr.msra.gmra.mrb[0].mxu1 %v330_v62  ;;  %1712 = vmatmul.mubr.f32.gmra.mrb[2].mxu0 %v348_v39  ;;  %v359_v18 = vsub.f32 %v2482_v24, %v358_v7 }
  0xa0   : > { %1852 = vmatpush3.bf16.msra.mxu1 %v2350_v51  ;;  %1952 = vmatpush3.bf16.msra.mxu0 %v2285_v60  ;;  %v2513_v16 = vpop.permute.xlu1 %187  ;;  %v2515_v37 = vpop.permute.xlu0 %184  ;;  %v369_v19 = vsub.f32 %v2480_v49, %v368_v35 }
  0xa1   : > { %vm198_vm8 = vcmp.eq.s32.totalorder %v2416_v1, %v2513_v16  ;;  %1714 = vmatprep.mubr.f32.mxu0 %v358_v7  ;;  %vm197_vm9 = vcmp.eq.s32.totalorder %v2416_v1, %v2515_v37  ;;  %1570 = vmatprep.mubr.f32.mxu1 %v340_v42  ;;  %v360_v21 = vand.u32 4294901760, %v359_v18  ;;  %v378_v39 = vand.u32 4294901760, %v2508_v30 }
  0xa2   : > { %v1346_v60 = vsel %vm198_vm8, 1.0, %v2081_v57  ;;  %v1345_v51 = vsel %vm197_vm9, 1.0, %v2081_v57  ;;  %1854 = vmatprep.subr.bf16.mxu1 %v2323_v10  ;;  %1954 = vmatprep.subr.bf16.mxu0 %v2325_v12  ;;  %v388_v54 = vand.u32 4294901760, %v2506_v2  ;;  %v370_v62 = vand.u32 4294901760, %v369_v19 }
  0xa3   : > { %v2534_v42 = vsub.f32 %v1346_v60, %v1346_v60  ;;  %v2536_v38 = vsub.f32 %v1345_v51, %v1345_v51  ;;  %1571 = vmatmul.mubr.f32.gmra.mrb[2].mxu1 %v350_v6  ;;  %1715 = vmatmul.mubr.f32.gmra.mrb[4].mxu0 %v368_v35  ;;  %v379_v7 = vsub.f32 %v2508_v30, %v378_v39 }
  0xa4   : > { %1856 = vmatpush3.bf16.msra.mxu1 %v2323_v10  ;;  %1956 = vmatpush3.bf16.msra.mxu0 %v2325_v12  ;;  %v389_v23 = vsub.f32 %v2506_v2, %v388_v54 }
  0xa5   : > { %1573 = vmatprep.mubr.f32.mxu1 %v360_v21  ;;  %1717 = vmatprep.mubr.f32.mxu0 %v378_v39  ;;  %v380_v57 = vand.u32 4294901760, %v379_v7  ;;  %v398_v33 = vand.u32 4294901760, %v2536_v38  ;;  %v408_v18 = vand.u32 4294901760, %v2534_v42 }
  0xa6   : > { %1858 = vmatprep.subr.bf16.mxu1 %v2343_v44  ;;  %1958 = vmatprep.subr.bf16.mxu0 %v2332_v22  ;;  %v390_v10 = vand.u32 4294901760, %v389_v23 }
  0xa7   : > { %1574 = vmatmul.mubr.f32.gmra.mrb[4].mxu1 %v370_v62  ;;  %1718 = vmatmul.mubr.f32.gmra.mrb[6].mxu0 %v388_v54  ;;  %v399_v35 = vsub.f32 %v2536_v38, %v398_v33  ;;  %v409_v6 = vsub.f32 %v2534_v42, %v408_v18 }
  0xa8   : > { %1860 = vmatpush3.bf16.msra.mxu1 %v2343_v44  ;;  %1960 = vmatpush3.bf16.msra.mxu0 %v2332_v22  ;;  %v2082_v44 = vmov 1.0  }
  0xa9   : > { %1576 = vmatprep.mubr.f32.mxu1 %v380_v57  ;;  %1720 = vmatprep.mubr.f32.mxu0 %v398_v33  ;;  %v400_v12 = vand.u32 4294901760, %v399_v35  ;;  %v410_v22 = vand.u32 4294901760, %v409_v6 }
  0xaa   : > { %1862 = vmatprep.subr.bf16.mxu1 %v2352_v56  ;;  %1962 = vmatprep.subr.bf16.mxu0 %v2362_v28 }
  0xab   : > { %1577 = vmatmul.mubr.f32.gmra.mrb[6].mxu1 %v390_v10  ;;  %1721 = vmatmul.mubr.f32.gmra.mrb[8].mxu0 %v408_v18 }
  0xac   : > { %1864 = vmatpush3.bf16.msra.mxu1 %v2352_v56  ;;  %1964 = vmatpush3.bf16.msra.mxu0 %v2362_v28 }
  0xad   : > { %1579 = vmatprep.mubr.f32.mxu1 %v400_v12  ;;  %1755 = vmatprep.mubr.msk.f32.mxu0 %vm189_vm1, %v2082_v44 }
  0xae   : > { %1866 = vmatprep.subr.bf16.mxu1 %v2371_v36  ;;  %1966 = vmatprep.subr.bf16.mxu0 %v2366_v29 }
  0xaf   : > { %1580 = vmatmul.mubr.f32.gmra.mrb[8].mxu1 %v410_v22 }
  0xb0   : > { %1868 = vmatpush3.bf16.msra.mxu1 %v2371_v36  ;;  %1968 = vmatpush3.bf16.msra.mxu0 %v2366_v29 }
  0xb1   : > { %1614 = vmatprep.mubr.msk.f32.mxu1 %vm189_vm1, %v2082_v44  ;;  %1870 = vmatprep.subr.bf16.mxu1 %v2376_v15 }
  0xb2   : > { %1970 = vmatprep.subr.bf16.mxu0 %v2384_v46 }
  0xb4   : > { %1872 = vmatpush3.bf16.msra.mxu1 %v2376_v15  ;;  %1972 = vmatpush3.bf16.msra.mxu0 %v2384_v46 }
  0xb5   : > { %1874 = vmatprep.subr.bf16.mxu1 %v2388_v27  ;;  %1974 = vmatprep.subr.bf16.mxu0 %v2386_v25 }
  0xb8   : > { %1876 = vmatpush3.bf16.msra.mxu1 %v2388_v27  ;;  %1976 = vmatpush3.bf16.msra.mxu0 %v2386_v25 }
  0xb9   : > { %1878 = vmatprep.subr.bf16.mxu1 %v2390_v40  ;;  %1978 = vmatprep.subr.bf16.mxu0 %v2134_v11 }
  0xbb   : > { %1756 = vmatmul.mubr.msk.f32.vlgmr.msra.gmra.mrb[0].mxu0 %vm190_vm3, %v2082_v44 }
  0xbc   : > { %1880 = vmatpush3.bf16.msra.mxu1 %v2390_v40  ;;  %1758 = vmatprep.mubr.msk.f32.mxu0 %vm191_vm0, %v2082_v44 }
  0xbd   : > { %1980 = vmatpush3.bf16.msra.mxu0 %v2134_v11  ;;  %1882 = vmatprep.subr.bf16.mxu1 %v2394_v41 }
  0xbe   : > { %1982 = vmatprep.subr.bf16.mxu0 %v2140_v14 }
  0xbf   : > { %1615 = vmatmul.mubr.msk.f32.vlgmr.msra.gmra.mrb[0].mxu1 %vm190_vm3, %v2082_v44  ;;  %1759 = vmatmul.mubr.msk.f32.gmra.mrb[2].mxu0 %vm192_vm2, %v2082_v44 }
  0xc0   : > { %1617 = vmatprep.mubr.msk.f32.mxu1 %vm191_vm0, %v2082_v44  ;;  %1884 = vmatpush3.bf16.msra.mxu1 %v2394_v41 }
  0xc1   : > { %1761 = vmatprep.mubr.msk.f32.mxu0 %vm193_vm5, %v2082_v44  ;;  %1984 = vmatpush3.bf16.msra.mxu0 %v2140_v14 }
  0xc2   : > { %1886 = vmatprep.subr.bf16.mxu1 %v2398_v52  ;;  %1986 = vmatprep.subr.bf16.mxu0 %v2170_v17 }
  0xc3   : > { %1618 = vmatmul.mubr.msk.f32.gmra.mrb[2].mxu1 %vm192_vm2, %v2082_v44  ;;  %1762 = vmatmul.mubr.msk.f32.gmra.mrb[4].mxu0 %vm194_vm4, %v2082_v44 }
  0xc4   : > { %1620 = vmatprep.mubr.msk.f32.mxu1 %vm193_vm5, %v2082_v44  ;;  %1888 = vmatpush3.bf16.msra.mxu1 %v2398_v52 }
  0xc5   : > { %1764 = vmatprep.mubr.msk.f32.mxu0 %vm195_vm7, %v2082_v44  ;;  %1988 = vmatpush3.bf16.msra.mxu0 %v2170_v17 }
  0xc6   : > { %1890 = vmatprep.subr.bf16.mxu1 %v2402_v53  ;;  %1990 = vmatprep.subr.bf16.mxu0 %v2196_v26 }
  0xc7   : > { %1621 = vmatmul.mubr.msk.f32.gmra.mrb[4].mxu1 %vm194_vm4, %v2082_v44  ;;  %1765 = vmatmul.mubr.msk.f32.gmra.mrb[6].mxu0 %vm196_vm6, %v2082_v44 }
  0xc8   : > { %1623 = vmatprep.mubr.msk.f32.mxu1 %vm195_vm7, %v2082_v44  ;;  %1892 = vmatpush3.bf16.msra.mxu1 %v2402_v53 }
  0xc9   : > { %1767 = vmatprep.mubr.msk.f32.mxu0 %vm197_vm9, %v2082_v44  ;;  %1992 = vmatpush3.bf16.msra.mxu0 %v2196_v26 }
  0xca   : > { %1894 = vmatprep.subr.bf16.mxu1 %v2406_v58  ;;  %1994 = vmatprep.subr.bf16.mxu0 %v2222_v34 }
  0xcb   : > { %1624 = vmatmul.mubr.msk.f32.gmra.mrb[6].mxu1 %vm196_vm6, %v2082_v44  ;;  %1768 = vmatmul.mubr.msk.f32.gmra.mrb[8].mxu0 %vm198_vm8, %v2082_v44 }
  0xcc   : > { %1626 = vmatprep.mubr.msk.f32.mxu1 %vm197_vm9, %v2082_v44  ;;  %1896 = vmatpush3.bf16.msra.mxu1 %v2406_v58 }
  0xcd   : > { %1996 = vmatpush3.bf16.msra.mxu0 %v2222_v34  ;;  %1802 = vmatprep.mubr.msk.f32.mxu0 %vm189_vm1, %v2082_v44 }
  0xce   : > { %1898 = vmatprep.subr.bf16.mxu1 %v2408_v59  ;;  %1998 = vmatprep.subr.bf16.mxu0 %v2266_v48 }
  0xcf   : > { %1627 = vmatmul.mubr.msk.f32.gmra.mrb[8].mxu1 %vm198_vm8, %v2082_v44 }
  0xd0   : > { %1900 = vmatpush3.bf16.msra.mxu1 %v2408_v59  ;;  %1661 = vmatprep.mubr.f32.mxu1 %v2436_v32 }
  0xd1   : > { %2000 = vmatpush3.bf16.msra.mxu0 %v2266_v48  ;;  %1902 = vmatprep.subr.bf16.mxu1 %v2410_v61 }
  0xd2   : > { %2002 = vmatprep.subr.bf16.mxu0 %v2299_v63 }
  0xd4   : > { %1904 = vmatpush3.bf16.msra.mxu1 %v2410_v61 }
  0xd5   : > { %2004 = vmatpush3.bf16.msra.mxu0 %v2299_v63  ;;  %1906 = vmatprep.subr.bf16.mxu1 %v2412_v0 }
  0xd6   : > { %2006 = vmatprep.subr.bf16.mxu0 %v2307_v3 }
  0xd8   : > { %1908 = vmatpush3.bf16.msra.mxu1 %v2412_v0 }
  0xd9   : > { %2008 = vmatpush3.bf16.msra.mxu0 %v2307_v3  ;;  %1910 = vmatprep.subr.bf16.mxu1 %v2414_v31 }
  0xdc   : > { %1803 = vmatmul.mubr.msk.f32.vlgmr.msra.gmra.mrb[0].mxu0 %vm190_vm3, %v2082_v44  ;;  %1912 = vmatpush3.bf16.msra.mxu1 %v2414_v31 }
  0xdd   : > { %1805 = vmatprep.mubr.msk.f32.mxu0 %vm191_vm0, %v2082_v44 }
  0xdf   : > { %1662 = vmatmul.mubr.f32.vlgmr.msra.gmra.mrb[0].mxu1 %v2458_v5 }
  0xe0   : > { %1806 = vmatmul.mubr.msk.f32.gmra.mrb[2].mxu0 %vm192_vm2, %v2082_v44  ;;  %1664 = vmatprep.mubr.f32.mxu1 %v2434_v8 }
  0xe1   : > { %1808 = vmatprep.mubr.msk.f32.mxu0 %vm193_vm5, %v2082_v44 }
  0xe3   : > { %1665 = vmatmul.mubr.f32.gmra.mrb[2].mxu1 %v2456_v4 }
  0xe4   : > { %1809 = vmatmul.mubr.msk.f32.gmra.mrb[4].mxu0 %vm194_vm4, %v2082_v44  ;;  %1667 = vmatprep.mubr.f32.mxu1 %v2482_v24 }
  0xe5   : > { %1811 = vmatprep.mubr.msk.f32.mxu0 %vm195_vm7, %v2082_v44 }
  0xe7   : > { %1668 = vmatmul.mubr.f32.gmra.mrb[4].mxu1 %v2480_v49 }
  0xe8   : > { %1812 = vmatmul.mubr.msk.f32.gmra.mrb[6].mxu0 %vm196_vm6, %v2082_v44  ;;  %1670 = vmatprep.mubr.f32.mxu1 %v2508_v30 }
  0xe9   : > { %1814 = vmatprep.mubr.msk.f32.mxu0 %vm197_vm9, %v2082_v44 }
  0xeb   : > { %1671 = vmatmul.mubr.f32.gmra.mrb[6].mxu1 %v2506_v2 }
  0xec   : > { %1815 = vmatmul.mubr.msk.f32.gmra.mrb[8].mxu0 %vm198_vm8, %v2082_v44  ;;  %1673 = vmatprep.mubr.f32.mxu1 %v2536_v38 }
  0xef   : > { %1674 = vmatmul.mubr.f32.gmra.mrb[8].mxu1 %v2534_v42 }
 0x1af   : > { %v1804_v11 = vpop.f32.mrb[0].mxu0 }
 0x1b0   : > { %v1205_v14 = vpop.f32.mrb[1].mxu0 }
 0x1b2   : > { %v1663_v17 = vpop.f32.mrb[0].mxu1 }
 0x1b3   : > { %v2009_v26 = vadd.f32 %v1804_v11, %v1663_v17  ;;  %v1807_v34 = vpop.f32.mrb[2].mxu0  ;;  %v721_v48 = vpop.f32.mrb[1].mxu1 }
 0x1b4   : > { %v2010_v63 = vadd.f32 %v1205_v14, %v721_v48  ;;  %v1217_v3 = vpop.f32.mrb[3].mxu0 }
 0x1b5   : > { %1265 = vst.msk [vmem:[%s2735_s24 + $0x8] sm:$0xff] %vm1263_vm10, %v2009_v26 }
 0x1b6   : > { %1264 = vst.msk [vmem:[%s2735_s24] sm:$0xff] %vm1263_vm10, %v2010_v63  ;;  %v1666_v56 = vpop.f32.mrb[2].mxu1 }
 0x1b7   : > { %v2011_v28 = vadd.f32 %v1807_v34, %v1666_v56  ;;  %v1810_v29 = vpop.f32.mrb[4].mxu0  ;;  %v735_v36 = vpop.f32.mrb[3].mxu1 }
 0x1b8   : > { %v2012_v15 = vadd.f32 %v1217_v3, %v735_v36  ;;  %v1229_v46 = vpop.f32.mrb[5].mxu0 }
 0x1b9   : > { %1267 = vst.msk [vmem:[%s2735_s24 + $0x18] sm:$0xff] %vm1263_vm10, %v2011_v28 }
 0x1ba   : > { %1266 = vst.msk [vmem:[%s2735_s24 + $0x10] sm:$0xff] %vm1263_vm10, %v2012_v15  ;;  %v1669_v25 = vpop.f32.mrb[4].mxu1 }
 0x1bb   : > { %v2013_v27 = vadd.f32 %v1810_v29, %v1669_v25  ;;  %v1813_v40 = vpop.f32.mrb[6].mxu0  ;;  %v749_v41 = vpop.f32.mrb[5].mxu1 }
 0x1bc   : > { %v2014_v52 = vadd.f32 %v1229_v46, %v749_v41  ;;  %v1241_v53 = vpop.f32.mrb[7].mxu0 }
 0x1bd   : > { %1269 = vst.msk [vmem:[%s2735_s24 + $0x28] sm:$0xff] %vm1263_vm10, %v2013_v27 }
 0x1be   : > { %1268 = vst.msk [vmem:[%s2735_s24 + $0x20] sm:$0xff] %vm1263_vm10, %v2014_v52  ;;  %v1672_v58 = vpop.f32.mrb[6].mxu1 }
 0x1bf   : > { %v2015_v59 = vadd.f32 %v1813_v40, %v1672_v58  ;;  %v1816_v61 = vpop.f32.mrb[8].mxu0  ;;  %v763_v0 = vpop.f32.mrb[7].mxu1 }
 0x1c0   : > { %v2016_v31 = vadd.f32 %v1241_v53, %v763_v0  ;;  %v1253_v1 = vpop.f32.mrb[9].mxu0 }
 0x1c1   : > { %1271 = vst.msk [vmem:[%s2735_s24 + $0x38] sm:$0xff] %vm1263_vm10, %v2015_v59 }
 0x1c2   : > { %1270 = vst.msk [vmem:[%s2735_s24 + $0x30] sm:$0xff] %vm1263_vm10, %v2016_v31  ;;  %v1675_v43 = vpop.f32.mrb[8].mxu1 }
 0x1c3   : > { %v2017_v47 = vadd.f32 %v1816_v61, %v1675_v43  ;;  %v777_v8 = vpop.f32.mrb[9].mxu1 }
 0x1c4   : > { %v2018_v32 = vadd.f32 %v1253_v1, %v777_v8 }
 0x1c5   : > { %1273 = vst.msk [vmem:[%s2735_s24 + $0x48] sm:$0xff] %vm1263_vm10, %v2017_v47 }
 0x1c6   : > { %1272 = vst.msk [vmem:[%s2735_s24 + $0x40] sm:$0xff] %vm1263_vm10, %v2018_v32 }
 0x1c7 PF: > { %s12_s9 = sadd.s32 1, %s2078_s9  }
 0x1c8   : > { %p9_p4 = scmp.ge.s32.totalorder %s12_s9, 4  }
 0x1ca   :  { %11 = sbr.rel (!%p9_p4) target bundleno = 1 (0x1), region = 58 }

</bundles_post_ra>
